<compile_context>
chip_gen: v6e
topology: v6e:2x2x1
jax: 0.10.0
libtpu: 0.0.40
codegen_flags: <defaults>
</compile_context>

<pallas_src>
import functools
import numpy as np
import jax
import jax.numpy as jnp
from jax.experimental import pallas as pl
from jax.experimental.pallas import tpu as pltpu


# ------------------------------ fused kernel -------------------------------

def mgae_fused_kernel(adj_enc_ref, adj_dec_ref, xt_ref, sel_ref,
                      we1_ref, be1_ref, we2_ref, be2_ref,
                      we2d_ref,
                      wd1_ref, bd1_ref, wd2_ref, bd2_ref,
                      logit_ref, *, e_pad):
    """Transposed layout: features on sublanes, (block-diag merged) nodes on lanes.

    A GraphConv  rst = D_in^-1/2 A^T D_out^-1/2 H W + b*D_in^-1/2  becomes
      rst^T = W^T (H^T A_right) + (b * in_norm)^T,
    where A_right = D_out^-1/2 A D_in^-1/2 is precomputed host-side.
    """
    f32 = jnp.float32
    adj_enc = adj_enc_ref[...]        # (2Np, 2Np) f32, encoder A_right (self-loops)
    adj_dec = adj_dec_ref[...]        # (2Np, 2Np) f32, decoder A_right (no self-loops)
    h = xt_ref[...]                   # (Fin, 2Np) f32

    def gconv(adj, h_in, w_ref, b_ref, residual, relu):
        agg = jnp.dot(h_in, adj, preferred_element_type=f32)            # (in, 2Np)
        rst = jnp.dot(w_ref[...], agg, preferred_element_type=f32)      # (out, 2Np)
        rst = rst + b_ref[...]                                          # b * in_norm (pre-scaled)
        if residual:
            rst = rst + h_in                                            # identity residual
        if relu:
            rst = jnp.maximum(rst, 0.0)
        return rst

    # Encoder (encoding=True): residual + ReLU on every layer.
    h = gconv(adj_enc, h, we1_ref, be1_ref, True, True)
    h = gconv(adj_enc, h, we2_ref, be2_ref, True, True)

    # encoder_to_decoder (bias-free linear):  rep^T = W_e2d^T @ h^T
    rep = jnp.dot(we2d_ref[...], h, preferred_element_type=f32)

    # Decoder: layer 1 residual + ReLU, layer 2 plain.
    d = gconv(adj_dec, rep, wd1_ref, bd1_ref, True, True)
    recon = gconv(adj_dec, d, wd2_ref, bd2_ref, False, False)           # (hid, 2Np)

    # Edge head: ONE gather matmul against the host-built one-hot selector
    # (columns 0..e_pad-1 = src endpoints, e_pad..2*e_pad-1 = dst endpoints),
    # then cosine similarity (eps=1e-6) with lane-dense (1, e_pad) logits.
    g = jnp.dot(recon, sel_ref[...], preferred_element_type=f32)        # (hid, 2*e_pad)
    s = g[:, :e_pad]
    t = g[:, e_pad:]
    dot_st = jnp.sum(s * t, axis=0, keepdims=True)                      # (1, e_pad)
    ns2 = jnp.sum(s * s, axis=0, keepdims=True)
    nt2 = jnp.sum(t * t, axis=0, keepdims=True)
    eps = 1e-6
    z = dot_st * jax.lax.rsqrt(jnp.maximum(ns2 * nt2, eps * eps))       # cosine logits
    logit_ref[...] = z                                                  # lane-dense store


# ------------------------------ kernel wrapper ------------------------------

@functools.partial(jax.jit, static_argnames=("num_mask_edges",))
def mgae_forward(adj_enc, adj_dec, x_t, sel, params, num_mask_edges):
    n2 = adj_enc.shape[0]                 # 2 * Np (merged node count)
    f_in = x_t.shape[0]
    hid = params[4].shape[0]              # we2d^T is (hid, hid)
    e_pad = sel.shape[1] // 2

    flops = (2 * f_in * n2 * n2 + 2 * hid * f_in * n2            # encoder layer 1
             + 3 * (2 * hid * n2 * n2 + 2 * hid * hid * n2)      # enc L2 + dec L1/L2
             + 2 * hid * hid * n2                                 # encoder_to_decoder
             + 2 * hid * n2 * (2 * e_pad))                        # endpoint gather
    bytes_accessed = (adj_enc.size + adj_dec.size + x_t.size + sel.size
                      + sum(int(np.prod(p.shape)) for p in params) + e_pad) * 4

    logits_pad = pl.pallas_call(
        functools.partial(mgae_fused_kernel, e_pad=e_pad),
        out_shape=jax.ShapeDtypeStruct((1, e_pad), jnp.float32),
        compiler_params=pltpu.CompilerParams(vmem_limit_bytes=16 * 1024 * 1024),
        cost_estimate=pl.CostEstimate(flops=int(flops),
                                      transcendentals=int(e_pad),
                                      bytes_accessed=int(bytes_accessed)),
    )(adj_enc, adj_dec, x_t, sel, *params)

    # BCEWithLogitsLoss (mean) over the 2E real logits, computed in the wrapper:
    # first E columns are positive edges (label 1), next E are negative (label 0).
    e = num_mask_edges
    z = logits_pad[0, :2 * e]
    labels = jnp.concatenate([jnp.ones((e,), jnp.float32),
                              jnp.zeros((e,), jnp.float32)])
    per = jnp.maximum(z, 0.0) - z * labels + jnp.log1p(jnp.exp(-jnp.abs(z)))
    loss = jnp.mean(per)
    return loss, z


# ------------------------------ host-side glue ------------------------------

def dense_graph_right(srcs, dsts, n, n_pad, self_loop):
    """Right-multiply normalized adjacency A_right = D_out^-1/2 A D_in^-1/2
    (padded to n_pad) plus the in-degree^-1/2 scaling for the fc bias."""
    srcs = np.asarray(srcs, np.int64)
    dsts = np.asarray(dsts, np.int64)
    if self_loop:
        srcs = np.concatenate([srcs, np.arange(n)])
        dsts = np.concatenate([dsts, np.arange(n)])
    adj = np.zeros((n_pad, n_pad), np.float32)
    np.add.at(adj, (srcs, dsts), 1.0)
    out_norm = np.power(np.clip(adj.sum(1), 1.0, None), -0.5).astype(np.float32)
    in_norm = np.power(np.clip(adj.sum(0), 1.0, None), -0.5).astype(np.float32)
    adj_right = out_norm[:, None] * adj * in_norm[None, :]
    return adj_right, in_norm


def block_diag2(a, b):
    n = a.shape[0]
    out = np.zeros((2 * n, 2 * n), np.float32)
    out[:n, :n] = a
    out[n:, n:] = b
    return out


def init_linear(key, fan_in, fan_out, bias=True):
    kw, kb = jax.random.split(key)
    lim = 1.0 / np.sqrt(fan_in)
    W = jax.random.uniform(kw, (fan_in, fan_out), jnp.float32, -lim, lim)
    if not bias:
        return W
    b = jax.random.uniform(kb, (1, fan_out), jnp.float32, -lim, lim)
    return W, b


if __name__ == "__main__":
    # MGAE hyperparams (gcn encoder / gcn decoder, relu, no norm, no dropout)
    in_dim, num_hidden, num_layers = 32, 32, 2
    N_total, num_edges = 16, 40
    mask_rate = 0.3
    assert in_dim == num_hidden  # identity residual everywhere (no res_W input)

    key = jax.random.PRNGKey(0)
    kx, ke1, ke2, kd1, kd2, ke2d = jax.random.split(key, 6)
    x = jax.random.normal(kx, (N_total, in_dim), jnp.float32)

    enc_p = [init_linear(ke1, in_dim, num_hidden),
             init_linear(ke2, num_hidden, num_hidden)]
    dec_p = [init_linear(kd1, num_hidden, num_hidden),
             init_linear(kd2, num_hidden, num_hidden)]
    e2d_W = init_linear(ke2d, num_hidden, num_hidden, bias=False)

    # ---- deterministic graph structure + edge masking (host-side glue) ----
    rng = np.random.default_rng(0)
    src = rng.integers(0, N_total, num_edges)
    dst = rng.integers(0, N_total, num_edges)

    num_mask_edges = int(mask_rate * num_edges)
    perm = rng.permutation(num_edges)
    mask_edges = perm[:num_mask_edges]

    # pos_mask_g = g.edge_subgraph(mask_edges) with node relabeling
    m_src, m_dst = src[mask_edges], dst[mask_edges]
    sub_nodes = np.unique(np.concatenate([m_src, m_dst]))
    relabel = {int(n): i for i, n in enumerate(sub_nodes)}
    p_src = np.array([relabel[int(s)] for s in m_src])
    p_dst = np.array([relabel[int(d)] for d in m_dst])
    n_pos = len(sub_nodes)

    # negative edges (reject batches where any position has node1 == node2)
    while True:
        n1 = rng.integers(0, n_pos, num_mask_edges)
        n2 = rng.integers(0, n_pos, num_mask_edges)
        if not np.any(n1 == n2):
            break
    n_neg = int(max(n1.max(), n2.max())) + 1

    # Pad both branches to one node count (multiple of 8 sublanes), then merge
    # pos/neg into one block-diagonal graph of 2*Np nodes.
    Np = ((max(n_pos, n_neg) + 7) // 8) * 8
    N2 = 2 * Np

    # encoder graphs get self-loops (dgl.add_self_loop); decoder graphs do not
    pe_adj, pe_in = dense_graph_right(p_src, p_dst, n_pos, Np, True)
    ne_adj, ne_in = dense_graph_right(n1, n2, n_neg, Np, True)
    pd_adj, pd_in = dense_graph_right(p_src, p_dst, n_pos, Np, False)
    nd_adj, nd_in = dense_graph_right(n1, n2, n_neg, Np, False)

    adj_enc = jnp.asarray(block_diag2(pe_adj, ne_adj))
    adj_dec = jnp.asarray(block_diag2(pd_adj, nd_adj))
    in_norm_enc = np.concatenate([pe_in, ne_in])      # (2Np,)
    in_norm_dec = np.concatenate([pd_in, nd_in])

    # reference does use_x = x[use_g.nodes()] on relabeled node ids -> x[:k];
    # transposed layout: features on sublanes, merged nodes on lanes.
    x_np = np.asarray(x)
    x_t = np.zeros((in_dim, N2), np.float32)
    x_t[:, :n_pos] = x_np[:n_pos].T
    x_t[:, Np:Np + n_neg] = x_np[:n_neg].T
    x_t = jnp.asarray(x_t)

    # One-hot endpoint selector: columns [0, e_pad) are edge sources, columns
    # [e_pad, 2*e_pad) are edge destinations; within each block, the first E
    # columns are positive edges, the next E are negative (offset by Np).
    E = num_mask_edges
    e_pad = max(128, ((2 * E + 127) // 128) * 128)
    assert 2 * E <= e_pad
    sel = np.zeros((N2, 2 * e_pad), np.float32)
    src_all = np.concatenate([p_src, n1 + Np])
    dst_all = np.concatenate([p_dst, n2 + Np])
    sel[src_all, np.arange(2 * E)] = 1.0
    sel[dst_all, e_pad + np.arange(2 * E)] = 1.0
    sel = jnp.asarray(sel)

    # Weights transposed for the feature-major layout; fc biases pre-scaled by
    # in_deg^-1/2 of the corresponding (merged) graph.
    def bias_t(b, in_norm):
        return jnp.asarray(np.asarray(b).T * in_norm[None, :])   # (hid, 2Np)

    params = (
        jnp.asarray(np.asarray(enc_p[0][0]).T), bias_t(enc_p[0][1], in_norm_enc),
        jnp.asarray(np.asarray(enc_p[1][0]).T), bias_t(enc_p[1][1], in_norm_enc),
        jnp.asarray(np.asarray(e2d_W).T),
        jnp.asarray(np.asarray(dec_p[0][0]).T), bias_t(dec_p[0][1], in_norm_dec),
        jnp.asarray(np.asarray(dec_p[1][0]).T), bias_t(dec_p[1][1], in_norm_dec),
    )

    # ------------------------------ forward ------------------------------
    loss, edge_logits = mgae_forward(adj_enc, adj_dec, x_t, sel, params,
                                     num_mask_edges=num_mask_edges)

    # TODO(synk): the reference also builds `reconstructed_adj` via a host-side
    # Python loop over .item() calls; forward() only consumes `loss`, so it is
    # omitted here.

    loss = jax.block_until_ready(loss)
    edge_logits = jax.block_until_ready(edge_logits)
    assert np.isfinite(np.asarray(loss)).all()
    assert np.isfinite(np.asarray(edge_logits)).all()
    print("KERNEL_OK")
</pallas_src>

<mosaic_0001>
module attributes {stable_mosaic.version = 11 : i64} {
  func.func @mgae_fused_kernel(%arg0: memref<32x32xf32, #tpu.memory_space<vmem>>, %arg1: memref<32x32xf32, #tpu.memory_space<vmem>>, %arg2: memref<32x32xf32, #tpu.memory_space<vmem>>, %arg3: memref<32x256xf32, #tpu.memory_space<vmem>>, %arg4: memref<32x32xf32, #tpu.memory_space<vmem>>, %arg5: memref<32x32xf32, #tpu.memory_space<vmem>>, %arg6: memref<32x32xf32, #tpu.memory_space<vmem>>, %arg7: memref<32x32xf32, #tpu.memory_space<vmem>>, %arg8: memref<32x32xf32, #tpu.memory_space<vmem>>, %arg9: memref<32x32xf32, #tpu.memory_space<vmem>>, %arg10: memref<32x32xf32, #tpu.memory_space<vmem>>, %arg11: memref<32x32xf32, #tpu.memory_space<vmem>>, %arg12: memref<32x32xf32, #tpu.memory_space<vmem>>, %arg13: memref<1x128xf32, #tpu.memory_space<vmem>>) attributes {dimension_semantics = [], scalar_prefetch = 0 : i64, scratch_operands = 0 : i64, tpu.core_type = #tpu.core_type<tc>} {
    %c0 = arith.constant 0 : index
    %c0_0 = arith.constant 0 : index
    %0 = vector.load %arg0[%c0, %c0_0] : memref<32x32xf32, #tpu.memory_space<vmem>>, vector<32x32xf32>
    %c0_1 = arith.constant 0 : index
    %c0_2 = arith.constant 0 : index
    %1 = vector.load %arg1[%c0_1, %c0_2] : memref<32x32xf32, #tpu.memory_space<vmem>>, vector<32x32xf32>
    %c0_3 = arith.constant 0 : index
    %c0_4 = arith.constant 0 : index
    %2 = vector.load %arg2[%c0_3, %c0_4] : memref<32x32xf32, #tpu.memory_space<vmem>>, vector<32x32xf32>
    %cst = arith.constant dense<0.000000e+00> : vector<32x32xf32>
    %3 = tpu.matmul %2, %0, %cst {dimension_numbers = #tpu.dot_dimension_numbers<[1], [0], [0], [1], [0, 0, 1, 1], [], []>} : vector<32x32xf32>, vector<32x32xf32>, vector<32x32xf32> -> vector<32x32xf32>
    %c0_5 = arith.constant 0 : index
    %c0_6 = arith.constant 0 : index
    %4 = vector.load %arg4[%c0_5, %c0_6] : memref<32x32xf32, #tpu.memory_space<vmem>>, vector<32x32xf32>
    %cst_7 = arith.constant dense<0.000000e+00> : vector<32x32xf32>
    %5 = tpu.matmul %4, %3, %cst_7 {dimension_numbers = #tpu.dot_dimension_numbers<[1], [0], [0], [1], [0, 0, 1, 1], [], []>} : vector<32x32xf32>, vector<32x32xf32>, vector<32x32xf32> -> vector<32x32xf32>
    %c0_8 = arith.constant 0 : index
    %c0_9 = arith.constant 0 : index
    %6 = vector.load %arg5[%c0_8, %c0_9] : memref<32x32xf32, #tpu.memory_space<vmem>>, vector<32x32xf32>
    %7 = arith.addf %5, %6 : vector<32x32xf32>
    %8 = arith.addf %7, %2 : vector<32x32xf32>
    %cst_10 = arith.constant 0.000000e+00 : f32
    %9 = vector.broadcast %cst_10 : f32 to vector<32x32xf32>
    %10 = arith.maximumf %8, %9 : vector<32x32xf32>
    %cst_11 = arith.constant dense<0.000000e+00> : vector<32x32xf32>
    %11 = tpu.matmul %10, %0, %cst_11 {dimension_numbers = #tpu.dot_dimension_numbers<[1], [0], [0], [1], [0, 0, 1, 1], [], []>} : vector<32x32xf32>, vector<32x32xf32>, vector<32x32xf32> -> vector<32x32xf32>
    %c0_12 = arith.constant 0 : index
    %c0_13 = arith.constant 0 : index
    %12 = vector.load %arg6[%c0_12, %c0_13] : memref<32x32xf32, #tpu.memory_space<vmem>>, vector<32x32xf32>
    %cst_14 = arith.constant dense<0.000000e+00> : vector<32x32xf32>
    %13 = tpu.matmul %12, %11, %cst_14 {dimension_numbers = #tpu.dot_dimension_numbers<[1], [0], [0], [1], [0, 0, 1, 1], [], []>} : vector<32x32xf32>, vector<32x32xf32>, vector<32x32xf32> -> vector<32x32xf32>
    %c0_15 = arith.constant 0 : index
    %c0_16 = arith.constant 0 : index
    %14 = vector.load %arg7[%c0_15, %c0_16] : memref<32x32xf32, #tpu.memory_space<vmem>>, vector<32x32xf32>
    %15 = arith.addf %13, %14 : vector<32x32xf32>
    %16 = arith.addf %15, %10 : vector<32x32xf32>
    %cst_17 = arith.constant 0.000000e+00 : f32
    %17 = vector.broadcast %cst_17 : f32 to vector<32x32xf32>
    %18 = arith.maximumf %16, %17 : vector<32x32xf32>
    %c0_18 = arith.constant 0 : index
    %c0_19 = arith.constant 0 : index
    %19 = vector.load %arg8[%c0_18, %c0_19] : memref<32x32xf32, #tpu.memory_space<vmem>>, vector<32x32xf32>
    %cst_20 = arith.constant dense<0.000000e+00> : vector<32x32xf32>
    %20 = tpu.matmul %19, %18, %cst_20 {dimension_numbers = #tpu.dot_dimension_numbers<[1], [0], [0], [1], [0, 0, 1, 1], [], []>} : vector<32x32xf32>, vector<32x32xf32>, vector<32x32xf32> -> vector<32x32xf32>
    %cst_21 = arith.constant dense<0.000000e+00> : vector<32x32xf32>
    %21 = tpu.matmul %20, %1, %cst_21 {dimension_numbers = #tpu.dot_dimension_numbers<[1], [0], [0], [1], [0, 0, 1, 1], [], []>} : vector<32x32xf32>, vector<32x32xf32>, vector<32x32xf32> -> vector<32x32xf32>
    %c0_22 = arith.constant 0 : index
    %c0_23 = arith.constant 0 : index
    %22 = vector.load %arg9[%c0_22, %c0_23] : memref<32x32xf32, #tpu.memory_space<vmem>>, vector<32x32xf32>
    %cst_24 = arith.constant dense<0.000000e+00> : vector<32x32xf32>
    %23 = tpu.matmul %22, %21, %cst_24 {dimension_numbers = #tpu.dot_dimension_numbers<[1], [0], [0], [1], [0, 0, 1, 1], [], []>} : vector<32x32xf32>, vector<32x32xf32>, vector<32x32xf32> -> vector<32x32xf32>
    %c0_25 = arith.constant 0 : index
    %c0_26 = arith.constant 0 : index
    %24 = vector.load %arg10[%c0_25, %c0_26] : memref<32x32xf32, #tpu.memory_space<vmem>>, vector<32x32xf32>
    %25 = arith.addf %23, %24 : vector<32x32xf32>
    %26 = arith.addf %25, %20 : vector<32x32xf32>
    %cst_27 = arith.constant 0.000000e+00 : f32
    %27 = vector.broadcast %cst_27 : f32 to vector<32x32xf32>
    %28 = arith.maximumf %26, %27 : vector<32x32xf32>
    %cst_28 = arith.constant dense<0.000000e+00> : vector<32x32xf32>
    %29 = tpu.matmul %28, %1, %cst_28 {dimension_numbers = #tpu.dot_dimension_numbers<[1], [0], [0], [1], [0, 0, 1, 1], [], []>} : vector<32x32xf32>, vector<32x32xf32>, vector<32x32xf32> -> vector<32x32xf32>
    %c0_29 = arith.constant 0 : index
    %c0_30 = arith.constant 0 : index
    %30 = vector.load %arg11[%c0_29, %c0_30] : memref<32x32xf32, #tpu.memory_space<vmem>>, vector<32x32xf32>
    %cst_31 = arith.constant dense<0.000000e+00> : vector<32x32xf32>
    %31 = tpu.matmul %30, %29, %cst_31 {dimension_numbers = #tpu.dot_dimension_numbers<[1], [0], [0], [1], [0, 0, 1, 1], [], []>} : vector<32x32xf32>, vector<32x32xf32>, vector<32x32xf32> -> vector<32x32xf32>
    %c0_32 = arith.constant 0 : index
    %c0_33 = arith.constant 0 : index
    %32 = vector.load %arg12[%c0_32, %c0_33] : memref<32x32xf32, #tpu.memory_space<vmem>>, vector<32x32xf32>
    %33 = arith.addf %31, %32 : vector<32x32xf32>
    %c0_34 = arith.constant 0 : index
    %c0_35 = arith.constant 0 : index
    %34 = vector.load %arg3[%c0_34, %c0_35] : memref<32x256xf32, #tpu.memory_space<vmem>>, vector<32x256xf32>
    %cst_36 = arith.constant dense<0.000000e+00> : vector<32x256xf32>
    %35 = tpu.matmul %33, %34, %cst_36 {dimension_numbers = #tpu.dot_dimension_numbers<[1], [0], [0], [1], [0, 0, 1, 1], [], []>} : vector<32x32xf32>, vector<32x256xf32>, vector<32x256xf32> -> vector<32x256xf32>
    %36 = vector.extract_strided_slice %35 {offsets = [0, 0], sizes = [32, 128], strides = [1, 1]} : vector<32x256xf32> to vector<32x128xf32>
    %37 = vector.extract_strided_slice %35 {offsets = [0, 128], sizes = [32, 128], strides = [1, 1]} : vector<32x256xf32> to vector<32x128xf32>
    %38 = arith.mulf %36, %37 : vector<32x128xf32>
    %cst_37 = arith.constant dense<0.000000e+00> : vector<128xf32>
    %39 = vector.multi_reduction <add>, %38, %cst_37 [0] : vector<32x128xf32> to vector<128xf32>
    %40 = vector.shape_cast %39 : vector<128xf32> to vector<1x128xf32>
    %41 = arith.mulf %36, %36 : vector<32x128xf32>
    %cst_38 = arith.constant dense<0.000000e+00> : vector<128xf32>
    %42 = vector.multi_reduction <add>, %41, %cst_38 [0] : vector<32x128xf32> to vector<128xf32>
    %43 = vector.shape_cast %42 : vector<128xf32> to vector<1x128xf32>
    %44 = arith.mulf %37, %37 : vector<32x128xf32>
    %cst_39 = arith.constant dense<0.000000e+00> : vector<128xf32>
    %45 = vector.multi_reduction <add>, %44, %cst_39 [0] : vector<32x128xf32> to vector<128xf32>
    %46 = vector.shape_cast %45 : vector<128xf32> to vector<1x128xf32>
    %47 = arith.mulf %43, %46 : vector<1x128xf32>
    %cst_40 = arith.constant 9.99999996E-13 : f32
    %48 = vector.broadcast %cst_40 : f32 to vector<1x128xf32>
    %49 = arith.maximumf %47, %48 : vector<1x128xf32>
    %50 = math.rsqrt %49 : vector<1x128xf32>
    %51 = arith.mulf %40, %50 : vector<1x128xf32>
    %c0_41 = arith.constant 0 : index
    %c0_42 = arith.constant 0 : index
    %52 = vector.load %arg13[%c0_41, %c0_42] : memref<1x128xf32, #tpu.memory_space<vmem>>, vector<1x128xf32>
    tpu.vector_store %arg13[%c0_41, %c0_42], %51 {strides = array<i32>} : memref<1x128xf32, #tpu.memory_space<vmem>>, vector<1x128xf32>,
    return
  }
}

</mosaic_0001>

<bundles_post_ra>
// kernel: mgae_forward.1
= control target key start
LH: loop header
LB: loop body
LE: loop exit
PB: predicated region body
PF: predicated region fallthrough
CT: control target
= control target key end

     0   :  { %18 = vsyncpa [#allocation3], 0  ;;  %s2076_s0 = inlined_call_operand.hbm [shape: f32[32,32], index: 0, kind: input, shape index: {}]   ;;  %s2077_s1 = inlined_call_operand.hbm [shape: f32[32,32], index: 1, kind: input, shape index: {}]   ;;  %s2078_s2 = inlined_call_operand.hbm [shape: f32[32,32], index: 2, kind: input, shape index: {}]   ;;  %s2079_s3 = inlined_call_operand.hbm [shape: f32[32,256], index: 3, kind: input, shape index: {}]   ;;  %s2080_s4 = inlined_call_operand.hbm [shape: f32[32,32], index: 4, kind: input, shape index: {}]   ;;  %s2081_s5 = inlined_call_operand.hbm [shape: f32[32,32], index: 5, kind: input, shape index: {}]   ;;  %s2082_s6 = inlined_call_operand.hbm [shape: f32[32,32], index: 6, kind: input, shape index: {}]   ;;  %s2083_s7 = inlined_call_operand.hbm [shape: f32[32,32], index: 7, kind: input, shape index: {}]   ;;  %s2084_s8 = inlined_call_operand.hbm [shape: f32[32,32], index: 8, kind: input, shape index: {}]   ;;  %s2085_s9 = inlined_call_operand.hbm [shape: f32[32,32], index: 9, kind: input, shape index: {}]   ;;  %s2086_s10 = inlined_call_operand.hbm [shape: f32[32,32], index: 10, kind: input, shape index: {}]   ;;  %s2087_s11 = inlined_call_operand.hbm [shape: f32[32,32], index: 11, kind: input, shape index: {}]   ;;  %s2088_s12 = inlined_call_operand.hbm [shape: f32[32,32], index: 12, kind: input, shape index: {}]   ;;  %s2089_s13 = inlined_call_operand.vmem [shape: f32[1,128], index: 13, kind: output, shape index: {}]  }
   0x1   :  { %19 = vsyncpa [#allocation5], 0 }
   0x2   :  { %20 = vsyncpa [#allocation8], 0 }
   0x3   :  { %21 = vsyncpa [#allocation11], 0 }
   0x4   :  { %22 = vsyncpa [#allocation14], 0 }
   0x5   :  { %23 = vsyncpa [#allocation17], 0 }
   0x6   :  { %24 = vsyncpa [#allocation20], 0  ;;  %s1870_s25 = smov [#allocation4]   ;;  %s1871_s27 = smov [#allocation7]  }
   0x7   :  { %s42_s26 = sshll.u32 %s1870_s25, 4  ;;  %s66_s28 = sshll.u32 %s1871_s27, 4  ;;  %s43_s26 = int_to_ptr.vmem [resolvable:$true] %s42_s26  ;;  %s67_s28 = int_to_ptr.vmem [resolvable:$true] %s66_s28 }
   0x8   :  { %s1604_s29 = scalar_lea.vmem %s43_s26, 512  ;;  %p1609_p1 = scmp.lt.s32.totalorder %s43_s26, %s43_s26 }
   0x9   :  { %p1605_p0 = scmp.ne.s32.totalorder %s43_s26, %s1604_s29  ;;  %p1610_p2 = scmp.lt.s32.totalorder %s1604_s29, %s1604_s29 }
   0xb   :  { %p1611_p3 = por %p1610_p2, %p1609_p1 }
   0xd   :  { %p1612_p4 = pnand %p1611_p3, %p1605_p0 }
   0xf   :  { %1615 = shalt.err (!%p1612_p4)
}
  0x10   :  { %s1872_s30 = smov 128   ;;  %s1873_s14 = smov 8  }
  0x11   :  { %48 = dma.hbm_to_vmem [thread:$0]  %s2077_s1, 512, %s43_s26, [#allocation5], %s1872_s30, %s1872_s30, %s1873_s14  }
  0x12   :  { %s1624_s17 = scalar_lea.vmem %s67_s28, 1024  ;;  %p1629_p6 = scmp.lt.s32.totalorder %s67_s28, %s67_s28 }
  0x13   :  { %p1625_p5 = scmp.ne.s32.totalorder %s67_s28, %s1624_s17  ;;  %p1630_p7 = scmp.lt.s32.totalorder %s1624_s17, %s1624_s17 }
  0x15   :  { %p1631_p8 = por %p1630_p7, %p1629_p6 }
  0x17   :  { %p1632_p9 = pnand %p1631_p8, %p1625_p5 }
  0x19   :  { %1635 = shalt.err (!%p1632_p9)
}
  0x1a   :  { %s1874_s18 = smov 256   ;;  %s1875_s19 = smov 16  }
  0x1b   :  { %72 = dma.hbm_to_vmem [thread:$0]  %s2079_s3, 1024, %s67_s28, [#allocation8], %s1874_s18, %s1874_s18, %s1875_s19  }
  0x1c   :  { %s1876_s22 = smov [#allocation10]   ;;  %s1877_s24 = smov [#allocation13]  }
  0x1d   :  { %s90_s23 = sshll.u32 %s1876_s22, 4  ;;  %s114_s25 = sshll.u32 %s1877_s24, 4  ;;  %s91_s23 = int_to_ptr.vmem [resolvable:$true] %s90_s23  ;;  %s115_s25 = int_to_ptr.vmem [resolvable:$true] %s114_s25 }
  0x1e   :  { %s1644_s1 = scalar_lea.vmem %s91_s23, 512  ;;  %p1649_p11 = scmp.lt.s32.totalorder %s91_s23, %s91_s23 }
  0x1f   :  { %p1645_p10 = scmp.ne.s32.totalorder %s91_s23, %s1644_s1  ;;  %p1650_p12 = scmp.lt.s32.totalorder %s1644_s1, %s1644_s1 }
  0x21   :  { %p1651_p13 = por %p1650_p12, %p1649_p11 }
  0x23   :  { %p1652_p0 = pnand %p1651_p13, %p1645_p10 }
  0x25   :  { %1655 = shalt.err (!%p1652_p0)
}
  0x26   :  { %96 = dma.hbm_to_vmem [thread:$0]  %s2081_s5, 512, %s91_s23, [#allocation11], %s1872_s30, %s1872_s30, %s1873_s14  }
  0x27   :  { %s1664_s3 = scalar_lea.vmem %s115_s25, 512  ;;  %p1669_p2 = scmp.lt.s32.totalorder %s115_s25, %s115_s25 }
  0x28   :  { %p1665_p1 = scmp.ne.s32.totalorder %s115_s25, %s1664_s3  ;;  %p1670_p3 = scmp.lt.s32.totalorder %s1664_s3, %s1664_s3 }
  0x2a   :  { %p1671_p4 = por %p1670_p3, %p1669_p2 }
  0x2c   :  { %p1672_p5 = pnand %p1671_p4, %p1665_p1 }
  0x2e   :  { %1675 = shalt.err (!%p1672_p5)
}
  0x2f   :  { %120 = dma.hbm_to_vmem [thread:$0]  %s2083_s7, 512, %s115_s25, [#allocation14], %s1872_s30, %s1872_s30, %s1873_s14  }
  0x30   :  { %s1878_s15 = smov [#allocation16]   ;;  %s1879_s17 = smov [#allocation19]  }
  0x31   :  { %s138_s16 = sshll.u32 %s1878_s15, 4  ;;  %s162_s18 = sshll.u32 %s1879_s17, 4  ;;  %s139_s16 = int_to_ptr.vmem [resolvable:$true] %s138_s16  ;;  %s163_s18 = int_to_ptr.vmem [resolvable:$true] %s162_s18 }
  0x32   :  { %s1684_s5 = scalar_lea.vmem %s139_s16, 512  ;;  %p1689_p7 = scmp.lt.s32.totalorder %s139_s16, %s139_s16 }
  0x33   :  { %p1685_p6 = scmp.ne.s32.totalorder %s139_s16, %s1684_s5  ;;  %p1690_p8 = scmp.lt.s32.totalorder %s1684_s5, %s1684_s5 }
  0x35   :  { %p1691_p9 = por %p1690_p8, %p1689_p7 }
  0x37   :  { %p1692_p10 = pnand %p1691_p9, %p1685_p6 }
  0x39   :  { %1695 = shalt.err (!%p1692_p10)
}
  0x3a   :  { %144 = dma.hbm_to_vmem [thread:$0]  %s2085_s9, 512, %s139_s16, [#allocation17], %s1872_s30, %s1872_s30, %s1873_s14  }
  0x3b   :  { %s1704_s7 = scalar_lea.vmem %s163_s18, 512  ;;  %p1709_p12 = scmp.lt.s32.totalorder %s163_s18, %s163_s18 }
  0x3c   :  { %p1705_p11 = scmp.ne.s32.totalorder %s163_s18, %s1704_s7  ;;  %p1710_p13 = scmp.lt.s32.totalorder %s1704_s7, %s1704_s7 }
  0x3e   :  { %p1711_p0 = por %p1710_p13, %p1709_p12 }
  0x40   :  { %p1712_p1 = pnand %p1711_p0, %p1705_p11 }
  0x42   :  { %1715 = shalt.err (!%p1712_p1)
}
  0x43   :  { %168 = dma.hbm_to_vmem [thread:$0]  %s2087_s11, 512, %s163_s18, [#allocation20], %s1872_s30, %s1872_s30, %s1873_s14  }
  0x44   :  { %s1880_s23 = smov [#allocation2]   ;;  %s1881_s25 = smov [#allocation6]  }
  0x45   :  { %s30_s24 = sshll.u32 %s1880_s23, 4  ;;  %s54_s1 = sshll.u32 %s1881_s25, 4  ;;  %s31_s24 = int_to_ptr.vmem [resolvable:$true] %s30_s24  ;;  %s55_s1 = int_to_ptr.vmem [resolvable:$true] %s54_s1 }
  0x46   :  { %s1724_s9 = scalar_lea.vmem %s31_s24, 512  ;;  %p1729_p3 = scmp.lt.s32.totalorder %s31_s24, %s31_s24 }
  0x47   :  { %p1725_p2 = scmp.ne.s32.totalorder %s31_s24, %s1724_s9  ;;  %p1730_p4 = scmp.lt.s32.totalorder %s1724_s9, %s1724_s9 }
  0x49   :  { %p1731_p5 = por %p1730_p4, %p1729_p3 }
  0x4b   :  { %p1732_p6 = pnand %p1731_p5, %p1725_p2 }
  0x4d   :  { %1735 = shalt.err (!%p1732_p6)
}
  0x4e   :  { %36 = dma.hbm_to_vmem [thread:$0]  %s2076_s0, 512, %s31_s24, [#allocation3], %s1872_s30, %s1872_s30, %s1873_s14  }
  0x4f   :  { %s1744_s11 = scalar_lea.vmem %s55_s1, 512  ;;  %p1749_p8 = scmp.lt.s32.totalorder %s55_s1, %s55_s1 }
  0x50   :  { %p1745_p7 = scmp.ne.s32.totalorder %s55_s1, %s1744_s11  ;;  %p1750_p9 = scmp.lt.s32.totalorder %s1744_s11, %s1744_s11 }
  0x52   :  { %p1751_p10 = por %p1750_p9, %p1749_p8 }
  0x54   :  { %p1752_p11 = pnand %p1751_p10, %p1745_p7 }
  0x56   :  { %1755 = shalt.err (!%p1752_p11)
}
  0x57   :  { %60 = dma.hbm_to_vmem [thread:$0]  %s2078_s2, 512, %s55_s1, [#allocation5], %s1872_s30, %s1872_s30, %s1873_s14  }
  0x58   :  { %s1882_s29 = smov [#allocation9]   ;;  %s1883_s16 = smov [#allocation12]  }
  0x59   :  { %s78_s15 = sshll.u32 %s1882_s29, 4  ;;  %s102_s17 = sshll.u32 %s1883_s16, 4  ;;  %s79_s15 = int_to_ptr.vmem [resolvable:$true] %s78_s15  ;;  %s103_s17 = int_to_ptr.vmem [resolvable:$true] %s102_s17 }
  0x5a   :  { %s1764_s0 = scalar_lea.vmem %s79_s15, 512  ;;  %p1769_p13 = scmp.lt.s32.totalorder %s79_s15, %s79_s15 }
  0x5b   :  { %p1765_p12 = scmp.ne.s32.totalorder %s79_s15, %s1764_s0  ;;  %p1770_p0 = scmp.lt.s32.totalorder %s1764_s0, %s1764_s0 }
  0x5d   :  { %p1771_p1 = por %p1770_p0, %p1769_p13 }
  0x5f   :  { %p1772_p2 = pnand %p1771_p1, %p1765_p12 }
  0x61   :  { %1775 = shalt.err (!%p1772_p2)
}
  0x62   :  { %84 = dma.hbm_to_vmem [thread:$0]  %s2080_s4, 512, %s79_s15, [#allocation8], %s1872_s30, %s1872_s30, %s1873_s14  }
  0x63   :  { %s1784_s2 = scalar_lea.vmem %s103_s17, 512  ;;  %p1789_p4 = scmp.lt.s32.totalorder %s103_s17, %s103_s17 }
  0x64   :  { %p1785_p3 = scmp.ne.s32.totalorder %s103_s17, %s1784_s2  ;;  %p1790_p5 = scmp.lt.s32.totalorder %s1784_s2, %s1784_s2 }
  0x66   :  { %p1791_p6 = por %p1790_p5, %p1789_p4 }
  0x68   :  { %p1792_p7 = pnand %p1791_p6, %p1785_p3 }
  0x6a   :  { %1795 = shalt.err (!%p1792_p7)
}
  0x6b   :  { %108 = dma.hbm_to_vmem [thread:$0]  %s2082_s6, 512, %s103_s17, [#allocation11], %s1872_s30, %s1872_s30, %s1873_s14  }
  0x6c   :  { %s1884_s7 = smov [#allocation15]   ;;  %s1885_s22 = smov [#allocation18]  }
  0x6d   :  { %s126_s21 = sshll.u32 %s1884_s7, 4  ;;  %s150_s23 = sshll.u32 %s1885_s22, 4  ;;  %s127_s21 = int_to_ptr.vmem [resolvable:$true] %s126_s21  ;;  %s151_s23 = int_to_ptr.vmem [resolvable:$true] %s150_s23 }
  0x6e   :  { %s1804_s4 = scalar_lea.vmem %s127_s21, 512  ;;  %p1809_p9 = scmp.lt.s32.totalorder %s127_s21, %s127_s21 }
  0x6f   :  { %p1805_p8 = scmp.ne.s32.totalorder %s127_s21, %s1804_s4  ;;  %p1810_p10 = scmp.lt.s32.totalorder %s1804_s4, %s1804_s4 }
  0x71   :  { %p1811_p11 = por %p1810_p10, %p1809_p9 }
  0x73   :  { %p1812_p12 = pnand %p1811_p11, %p1805_p8 }
  0x75   :  { %1815 = shalt.err (!%p1812_p12)
}
  0x76   :  { %132 = dma.hbm_to_vmem [thread:$0]  %s2084_s8, 512, %s127_s21, [#allocation14], %s1872_s30, %s1872_s30, %s1873_s14  }
  0x77   :  { %s1824_s6 = scalar_lea.vmem %s151_s23, 512  ;;  %p1829_p0 = scmp.lt.s32.totalorder %s151_s23, %s151_s23 }
  0x78   :  { %p1825_p13 = scmp.ne.s32.totalorder %s151_s23, %s1824_s6  ;;  %p1830_p1 = scmp.lt.s32.totalorder %s1824_s6, %s1824_s6 }
  0x7a   :  { %p1831_p2 = por %p1830_p1, %p1829_p0 }
  0x7c   :  { %p1832_p3 = pnand %p1831_p2, %p1825_p13 }
  0x7e   :  { %1835 = shalt.err (!%p1832_p3)
}
  0x7f   :  { %156 = dma.hbm_to_vmem [thread:$0]  %s2086_s10, 512, %s151_s23, [#allocation17], %s1872_s30, %s1872_s30, %s1873_s14  }
  0x80   :  { %s1886_s26 = smov [#allocation21]  }
  0x81   :  { %s174_s27 = sshll.u32 %s1886_s26, 4  ;;  %s175_s27 = int_to_ptr.vmem [resolvable:$true] %s174_s27 }
  0x82   :  { %s1844_s11 = scalar_lea.vmem %s175_s27, 512  ;;  %p1849_p5 = scmp.lt.s32.totalorder %s175_s27, %s175_s27 }
  0x83   :  { %p1845_p4 = scmp.ne.s32.totalorder %s175_s27, %s1844_s11  ;;  %p1850_p6 = scmp.lt.s32.totalorder %s1844_s11, %s1844_s11 }
  0x85   :  { %p1851_p7 = por %p1850_p6, %p1849_p5 }
  0x87   :  { %p1852_p8 = pnand %p1851_p7, %p1845_p4 }
  0x89   :  { %1855 = shalt.err (!%p1852_p8)
}
  0x8a   :  { %180 = dma.hbm_to_vmem [thread:$0]  %s2088_s12, 512, %s175_s27, [#allocation20], %s1872_s30, %s1872_s30, %s1873_s14  }
  0x8b   :  { %1856 = dma.done.wait [#allocation3], 512  }
  0x8c   :  { %1857 = vsyncadd [#allocation3], 4294966784 }
  0x8d   :  { %1858 = dma.done.wait [#allocation5], 1024  }
  0x8e   :  { %1859 = vsyncadd [#allocation5], 4294966272 }
  0x8f   :  { %1860 = dma.done.wait [#allocation8], 1536  }
  0x90   :  { %1861 = vsyncadd [#allocation8], 4294965760 }
  0x91   :  { %1862 = dma.done.wait [#allocation11], 1024  }
  0x92   :  { %1863 = vsyncadd [#allocation11], 4294966272 }
  0x93   :  { %1864 = dma.done.wait [#allocation14], 1024  }
  0x94   :  { %1865 = vsyncadd [#allocation14], 4294966272 }
  0x95   :  { %1866 = dma.done.wait [#allocation17], 1024  }
  0x96   :  { %1867 = vsyncadd [#allocation17], 4294966272 }
  0x97   :  { %1868 = dma.done.wait [#allocation20], 1024  }
  0x98   :  { %1869 = vsyncadd [#allocation20], 4294966272  ;;  %vm232_vm0 = vcmask 261120   ;;  %v223_v0 = vld [vmem:[#allocation2 + $0x18] sm:$0xff]  ;;  %v222_v1 = vld [vmem:[#allocation2 + $0x10] sm:$0xff] }
  0x99   :  { %1442 = vmatprep.subr.mxu0 %v223_v0  ;;  %v228_v2 = vld [vmem:[#allocation6] sm:$0xff]  ;;  %v221_v3 = vld [vmem:[#allocation2 + $0x8] sm:$0xff]  ;;  %v230_v6 = vld [vmem:[#allocation6 + $0x10] sm:$0xff] }
  0x9a   :  { %1443 = vmatpush3.msra.mxu0 %v223_v0  ;;  %1450 = vmatprep.mubr.msk.f32.mxu0 %vm232_vm0, %v228_v2  ;;  %v220_v4 = vld [vmem:[#allocation2] sm:$0xff]  ;;  %v229_v5 = vld [vmem:[#allocation6 + $0x8] sm:$0xff]  ;;  %v231_v7 = vld [vmem:[#allocation6 + $0x18] sm:$0xff] }
  0x9b   :  { %1444 = vmatprep.subr.mxu0 %v222_v1  ;;  %v330_v8 = vld [vmem:[#allocation9] sm:$0xff]  ;;  %v331_v13 = vld [vmem:[#allocation9 + $0x8] sm:$0xff]  ;;  %v332_v14 = vld [vmem:[#allocation9 + $0x10] sm:$0xff] }
  0x9c   :  { %1445 = vmatpush3.msra.mxu0 %v222_v1  ;;  %1464 = vmatprep.mubr.msk.f32.mxu1 %vm232_vm0, %v330_v8  ;;  %v333_v15 = vld [vmem:[#allocation9 + $0x18] sm:$0xff]  ;;  %v335_v16 = vld [vmem:[#allocation10 + $0x8] sm:$0xff]  ;;  %v334_v18 = vld [vmem:[#allocation10] sm:$0xff] }
  0x9d   :  { %1446 = vmatprep.subr.mxu0 %v221_v3  ;;  %v337_v21 = vld [vmem:[#allocation10 + $0x18] sm:$0xff]  ;;  %v336_v25 = vld [vmem:[#allocation10 + $0x10] sm:$0xff]  ;;  %v540_v36 = vld [vmem:[#allocation12] sm:$0xff] }
  0x9e   :  { %1447 = vmatpush3.msra.mxu0 %v221_v3  ;;  %v541_v41 = vld [vmem:[#allocation12 + $0x8] sm:$0xff]  ;;  %v542_v42 = vld [vmem:[#allocation12 + $0x10] sm:$0xff]  ;;  %v543_v43 = vld [vmem:[#allocation12 + $0x18] sm:$0xff] }
  0x9f   :  { %1448 = vmatprep.subr.mxu0 %v220_v4  ;;  %v653_v44 = vld [vmem:[#allocation15] sm:$0xff]  ;;  %v227_v45 = vld [vmem:[#allocation4 + $0x18] sm:$0xff]  ;;  %v226_v46 = vld [vmem:[#allocation4 + $0x10] sm:$0xff] }
  0xa0   :  { %1449 = vmatpush3.msra.mxu0 %v220_v4  ;;  %v545_v48 = vld [vmem:[#allocation13 + $0x8] sm:$0xff]  ;;  %v547_v50 = vld [vmem:[#allocation13 + $0x18] sm:$0xff]  ;;  %v544_v51 = vld [vmem:[#allocation13] sm:$0xff] }
  0xa1   :  { %1451 = vmatmul.mubr.msk.f32.vlgmr.msra.gmra.mxu0 %vm232_vm0, %v229_v5  ;;  %1470 = vmatprep.subr.mxu0 %v223_v0  ;;  %v546_v53 = vld [vmem:[#allocation13 + $0x10] sm:$0xff] }
  0xa2   :  { %1453 = vmatprep.mubr.msk.f32.mxu0 %vm232_vm0, %v230_v6  ;;  %1471 = vmatpush3.msra.mxu0 %v223_v0 }
  0xa3   :  { %1472 = vmatprep.subr.mxu0 %v222_v1 }
  0xa4   :  { %1473 = vmatpush3.msra.mxu0 %v222_v1 }
  0xa5   :  { %1454 = vmatmul.mubr.msk.f32.gmra.mxu0 %vm232_vm0, %v231_v7  ;;  %1474 = vmatprep.subr.mxu0 %v221_v3 }
  0xa6   :  { %1475 = vmatpush3.msra.mxu0 %v221_v3  ;;  %v654_v3 = vld [vmem:[#allocation15 + $0x8] sm:$0xff] }
  0xa7   :  { %1476 = vmatprep.subr.mxu0 %v220_v4 }
  0xa8   :  { %1477 = vmatpush3.msra.mxu0 %v220_v4  ;;  %v655_v4 = vld [vmem:[#allocation15 + $0x10] sm:$0xff] }
 0x161   :  { %v1452_v9 = vpop.f32.mrf.mxu0 }
 0x163   :  { %v311_v10 = vpop.f32.mrf.mxu0 }
 0x165   :  { %v1455_v11 = vpop.f32.mrf.mxu0 }
 0x166   :  { %1456 = vmatprep.subr.mxu1 %v1455_v11 }
 0x167   :  { %v321_v12 = vpop.f32.mrf.mxu0  ;;  %1457 = vmatpush3.msra.mxu1 %v1455_v11 }
 0x168   :  { %1458 = vmatprep.subr.mxu1 %v321_v12 }
 0x169   :  { %1459 = vmatpush3.msra.mxu1 %v321_v12  ;;  %v851_v12 = vld [vmem:[#allocation16] sm:$0xff] }
 0x16a   :  { %1460 = vmatprep.subr.mxu1 %v1452_v9 }
 0x16b   :  { %1461 = vmatpush3.msra.mxu1 %v1452_v9 }
 0x16c   :  { %1462 = vmatprep.subr.mxu1 %v311_v10 }
 0x16d   :  { %1463 = vmatpush3.msra.mxu1 %v311_v10 }
 0x16e   :  { %1465 = vmatmul.mubr.msk.f32.vlgmr.msra.gmra.mxu1 %vm232_vm0, %v331_v13 }
 0x16f   :  { %1467 = vmatprep.mubr.msk.f32.mxu1 %vm232_vm0, %v332_v14 }
 0x172   :  { %1468 = vmatmul.mubr.msk.f32.gmra.mxu1 %vm232_vm0, %v333_v15 }
 0x173   :  { %1492 = vmatprep.mubr.msk.f32.mxu1 %vm232_vm0, %v540_v36 }
 0x22e   :  { %v1466_v17 = vpop.f32.mrf.mxu1 }
 0x22f   :  { %v422_v19 = vadd.f32 %v1466_v17, %v335_v16  ;;  %v852_v17 = vld [vmem:[#allocation16 + $0x8] sm:$0xff] }
 0x230   :  { %v416_v20 = vpop.f32.mrf.mxu1 }
 0x231   :  { %v417_v22 = vadd.f32 %v416_v20, %v334_v18  ;;  %v436_v23 = vadd.f32 %v422_v19, %v229_v5  ;;  %v656_v5 = vld [vmem:[#allocation15 + $0x18] sm:$0xff]  ;;  %v853_v18 = vld [vmem:[#allocation16 + $0x10] sm:$0xff]  ;;  %v856_v20 = vld [vmem:[#allocation18 + $0x8] sm:$0xff] }
 0x232   :  { %v1469_v24 = vpop.f32.mrf.mxu1  ;;  %v854_v19 = vld [vmem:[#allocation16 + $0x18] sm:$0xff] }
 0x233   :  { %v435_v26 = vadd.f32 %v417_v22, %v228_v2  ;;  %v432_v27 = vadd.f32 %v1469_v24, %v337_v21  ;;  %v440_v31 = vmax.f32 %v436_v23, 0.0  ;;  %v855_v22 = vld [vmem:[#allocation18] sm:$0xff] }
 0x234   :  { %v426_v28 = vpop.f32.mrf.mxu1 }
 0x235   :  { %v439_v29 = vmax.f32 %v435_v26, 0.0  ;;  %v427_v30 = vadd.f32 %v426_v28, %v336_v25  ;;  %v438_v32 = vadd.f32 %v432_v27, %v231_v7  ;;  %v224_v7 = vld [vmem:[#allocation4] sm:$0xff]  ;;  %v858_v25 = vld [vmem:[#allocation18 + $0x18] sm:$0xff] }
 0x237   :  { %v437_v33 = vadd.f32 %v427_v30, %v230_v6  ;;  %1478 = vmatprep.mubr.msk.f32.mxu0 %vm232_vm0, %v439_v29  ;;  %v442_v35 = vmax.f32 %v438_v32, 0.0  ;;  %v225_v6 = vld [vmem:[#allocation4 + $0x8] sm:$0xff] }
 0x238   :  { %1479 = vmatmul.mubr.msk.f32.vlgmr.msra.gmra.mxu0 %vm232_vm0, %v440_v31 }
 0x239   :  { %v441_v34 = vmax.f32 %v437_v33, 0.0 }
 0x23b   :  { %1481 = vmatprep.mubr.msk.f32.mxu0 %vm232_vm0, %v441_v34 }
 0x23c   :  { %1482 = vmatmul.mubr.msk.f32.gmra.mxu0 %vm232_vm0, %v442_v35 }
 0x23d   :  { %1506 = vmatprep.mubr.msk.f32.mxu0 %vm232_vm0, %v653_v44  ;;  %v1170_v44 = vld [vmem:[#allocation7 + $0x20] sm:$0xff] }
 0x2f8   :  { %v1480_v37 = vpop.f32.mrf.mxu0 }
 0x2fa   :  { %v521_v38 = vpop.f32.mrf.mxu0 }
 0x2fc   :  { %v1483_v39 = vpop.f32.mrf.mxu0 }
 0x2fd   :  { %1484 = vmatprep.subr.mxu1 %v1483_v39 }
 0x2fe   :  { %v531_v40 = vpop.f32.mrf.mxu0  ;;  %1485 = vmatpush3.msra.mxu1 %v1483_v39 }
 0x2ff   :  { %1486 = vmatprep.subr.mxu1 %v531_v40 }
 0x300   :  { %1487 = vmatpush3.msra.mxu1 %v531_v40  ;;  %v1061_v40 = vld [vmem:[#allocation19] sm:$0xff] }
 0x301   :  { %1488 = vmatprep.subr.mxu1 %v1480_v37 }
 0x302   :  { %1489 = vmatpush3.msra.mxu1 %v1480_v37 }
 0x303   :  { %1490 = vmatprep.subr.mxu1 %v521_v38 }
 0x304   :  { %1491 = vmatpush3.msra.mxu1 %v521_v38 }
 0x305   :  { %1493 = vmatmul.mubr.msk.f32.vlgmr.msra.gmra.mxu1 %vm232_vm0, %v541_v41  ;;  %1512 = vmatprep.subr.mxu1 %v227_v45  ;;  %v1173_v41 = vld [vmem:[#allocation7 + $0x38] sm:$0xff] }
 0x306   :  { %1495 = vmatprep.mubr.msk.f32.mxu1 %vm232_vm0, %v542_v42  ;;  %1513 = vmatpush3.msra.mxu1 %v227_v45  ;;  %v1172_v42 = vld [vmem:[#allocation7 + $0x30] sm:$0xff] }
 0x307   :  { %1514 = vmatprep.subr.mxu1 %v226_v46 }
 0x308   :  { %1515 = vmatpush3.msra.mxu1 %v226_v46 }
 0x309   :  { %1496 = vmatmul.mubr.msk.f32.gmra.mxu1 %vm232_vm0, %v543_v43  ;;  %1516 = vmatprep.subr.mxu1 %v225_v6  ;;  %v1171_v43 = vld [vmem:[#allocation7 + $0x28] sm:$0xff] }
 0x30a   :  { %1517 = vmatpush3.msra.mxu1 %v225_v6 }
 0x30b   :  { %1518 = vmatprep.subr.mxu1 %v224_v7 }
 0x30c   :  { %1519 = vmatpush3.msra.mxu1 %v224_v7 }
 0x30d   :  { %1540 = vmatprep.subr.mxu1 %v227_v45 }
 0x3c5   :  { %v1494_v47 = vpop.f32.mrf.mxu1 }
 0x3c6   :  { %v632_v54 = vadd.f32 %v1494_v47, %v545_v48 }
 0x3c7   :  { %v626_v49 = vpop.f32.mrf.mxu1 }
 0x3c8   :  { %v627_v57 = vadd.f32 %v626_v49, %v544_v51  ;;  %v646_v60 = vadd.f32 %v632_v54, %v440_v31  ;;  %v1063_v51 = vld [vmem:[#allocation19 + $0x10] sm:$0xff]  ;;  %v1167_v54 = vld [vmem:[#allocation7 + $0x8] sm:$0xff] }
 0x3c9   :  { %v1497_v52 = vpop.f32.mrf.mxu1 }
 0x3ca   :  { %v642_v55 = vadd.f32 %v1497_v52, %v547_v50  ;;  %v645_v63 = vadd.f32 %v627_v57, %v439_v29  ;;  %v650_v1 = vmax.f32 %v646_v60, 0.0  ;;  %v857_v29 = vld [vmem:[#allocation18 + $0x10] sm:$0xff]  ;;  %v1062_v50 = vld [vmem:[#allocation19 + $0x8] sm:$0xff]  ;;  %v1064_v52 = vld [vmem:[#allocation19 + $0x18] sm:$0xff] }
 0x3cb   :  { %v636_v56 = vpop.f32.mrf.mxu1  ;;  %v1066_v57 = vld [vmem:[#allocation21 + $0x8] sm:$0xff] }
 0x3cc   :  { %v648_v58 = vadd.f32 %v642_v55, %v442_v35  ;;  %v637_v59 = vadd.f32 %v636_v56, %v546_v53  ;;  %v649_v2 = vmax.f32 %v645_v63, 0.0  ;;  %v1168_v53 = vld [vmem:[#allocation7 + $0x10] sm:$0xff]  ;;  %v1166_v55 = vld [vmem:[#allocation7] sm:$0xff]  ;;  %v1887_v56 = vmov 0.0  }
 0x3ce   :  { %v652_v61 = vmax.f32 %v648_v58, 0.0  ;;  %v647_v62 = vadd.f32 %v637_v59, %v441_v34  ;;  %v1065_v59 = vld [vmem:[#allocation21] sm:$0xff] }
 0x3d0   :  { %v651_v0 = vmax.f32 %v647_v62, 0.0  ;;  %1498 = vmatprep.subr.mxu0 %v652_v61 }
 0x3d1   :  { %1499 = vmatpush3.msra.mxu0 %v652_v61 }
 0x3d2   :  { %1500 = vmatprep.subr.mxu0 %v651_v0 }
 0x3d3   :  { %1501 = vmatpush3.msra.mxu0 %v651_v0  ;;  %v1067_v0 = vld [vmem:[#allocation21 + $0x10] sm:$0xff] }
 0x3d4   :  { %1502 = vmatprep.subr.mxu0 %v650_v1 }
 0x3d5   :  { %1503 = vmatpush3.msra.mxu0 %v650_v1 }
 0x3d6   :  { %1504 = vmatprep.subr.mxu0 %v649_v2 }
 0x3d7   :  { %1505 = vmatpush3.msra.mxu0 %v649_v2 }
 0x3d8   :  { %1507 = vmatmul.mubr.msk.f32.vlgmr.msra.gmra.mxu0 %vm232_vm0, %v654_v3  ;;  %v1068_v3 = vld [vmem:[#allocation21 + $0x18] sm:$0xff] }
 0x3d9   :  { %1509 = vmatprep.mubr.msk.f32.mxu0 %vm232_vm0, %v655_v4 }
 0x3dc   :  { %1510 = vmatmul.mubr.msk.f32.gmra.mxu0 %vm232_vm0, %v656_v5 }
 0x3dd   :  { %1534 = vmatprep.mubr.msk.f32.mxu0 %vm232_vm0, %v851_v12 }
 0x498   :  { %v1508_v8 = vpop.f32.mrf.mxu0 }
 0x49a   :  { %v735_v9 = vpop.f32.mrf.mxu0 }
 0x49b   :  { %1520 = vmatprep.mubr.msk.f32.mxu1 %vm232_vm0, %v735_v9 }
 0x49c   :  { %v1511_v10 = vpop.f32.mrf.mxu0  ;;  %1521 = vmatmul.mubr.msk.f32.vlgmr.msra.gmra.mxu1 %vm232_vm0, %v1508_v8 }
 0x49d   :  { %1541 = vmatpush3.msra.mxu1 %v227_v45  ;;  %v1169_v45 = vld [vmem:[#allocation7 + $0x18] sm:$0xff] }
 0x49e   :  { %v745_v11 = vpop.f32.mrf.mxu0  ;;  %1542 = vmatprep.subr.mxu1 %v226_v46 }
 0x49f   :  { %1523 = vmatprep.mubr.msk.f32.mxu1 %vm232_vm0, %v745_v11  ;;  %1543 = vmatpush3.msra.mxu1 %v226_v46 }
 0x4a0   :  { %1524 = vmatmul.mubr.msk.f32.gmra.mxu1 %vm232_vm0, %v1511_v10  ;;  %1544 = vmatprep.subr.mxu1 %v225_v6 }
 0x4a1   :  { %1545 = vmatpush3.msra.mxu1 %v225_v6 }
 0x4a2   :  { %1546 = vmatprep.subr.mxu1 %v224_v7 }
 0x4a3   :  { %1547 = vmatpush3.msra.mxu1 %v224_v7 }
 0x4a4   :  { %1568 = vmatprep.subr.mxu1 %v1173_v41 }
 0x55c   :  { %v1522_v13 = vpop.f32.mrf.mxu1 }
 0x55e   :  { %v832_v14 = vpop.f32.mrf.mxu1 }
 0x560   :  { %v1525_v15 = vpop.f32.mrf.mxu1 }
 0x561   :  { %1526 = vmatprep.subr.mxu0 %v1525_v15 }
 0x562   :  { %v842_v16 = vpop.f32.mrf.mxu1  ;;  %1527 = vmatpush3.msra.mxu0 %v1525_v15 }
 0x563   :  { %1528 = vmatprep.subr.mxu0 %v842_v16 }
 0x564   :  { %1529 = vmatpush3.msra.mxu0 %v842_v16 }
 0x565   :  { %1530 = vmatprep.subr.mxu0 %v1522_v13 }
 0x566   :  { %1531 = vmatpush3.msra.mxu0 %v1522_v13 }
 0x567   :  { %1532 = vmatprep.subr.mxu0 %v832_v14 }
 0x568   :  { %1533 = vmatpush3.msra.mxu0 %v832_v14 }
 0x569   :  { %1535 = vmatmul.mubr.msk.f32.vlgmr.msra.gmra.mxu0 %vm232_vm0, %v852_v17 }
 0x56a   :  { %1537 = vmatprep.mubr.msk.f32.mxu0 %vm232_vm0, %v853_v18 }
 0x56d   :  { %1538 = vmatmul.mubr.msk.f32.gmra.mxu0 %vm232_vm0, %v854_v19 }
 0x56e   :  { %1562 = vmatprep.mubr.msk.f32.mxu0 %vm232_vm0, %v1061_v40 }
 0x629   :  { %v1536_v21 = vpop.f32.mrf.mxu0 }
 0x62a   :  { %v943_v23 = vadd.f32 %v1536_v21, %v856_v20 }
 0x62b   :  { %v937_v24 = vpop.f32.mrf.mxu0 }
 0x62c   :  { %v938_v26 = vadd.f32 %v937_v24, %v855_v22  ;;  %v957_v27 = vadd.f32 %v1508_v8, %v943_v23 }
 0x62d   :  { %v1539_v28 = vpop.f32.mrf.mxu0 }
 0x62e   :  { %v956_v30 = vadd.f32 %v938_v26, %v735_v9  ;;  %v953_v31 = vadd.f32 %v1539_v28, %v858_v25  ;;  %v961_v35 = vmax.f32 %v957_v27, 0.0 }
 0x62f   :  { %v947_v32 = vpop.f32.mrf.mxu0 }
 0x630   :  { %v960_v33 = vmax.f32 %v956_v30, 0.0  ;;  %v948_v34 = vadd.f32 %v947_v32, %v857_v29  ;;  %v959_v36 = vadd.f32 %v1511_v10, %v953_v31 }
 0x632   :  { %v958_v37 = vadd.f32 %v948_v34, %v745_v11  ;;  %1548 = vmatprep.mubr.msk.f32.mxu1 %vm232_vm0, %v960_v33  ;;  %v963_v39 = vmax.f32 %v959_v36, 0.0 }
 0x633   :  { %1549 = vmatmul.mubr.msk.f32.vlgmr.msra.gmra.mxu1 %vm232_vm0, %v961_v35 }
 0x634   :  { %v962_v38 = vmax.f32 %v958_v37, 0.0  ;;  %1572 = vmatpush1.msra.mxu1 %v1172_v42 }
 0x635   :  { %1569 = vmatprep.subr.mxu1 %v1171_v43 }
 0x636   :  { %1551 = vmatprep.mubr.msk.f32.mxu1 %vm232_vm0, %v962_v38  ;;  %1573 = vmatpush1.msra.mxu1 %v1170_v44 }
 0x637   :  { %1552 = vmatmul.mubr.msk.f32.gmra.mxu1 %vm232_vm0, %v963_v39  ;;  %1570 = vmatprep.subr.mxu1 %v1169_v45 }
 0x638   :  { %1574 = vmatpush1.msra.mxu1 %v1168_v53  ;;  %1256 = vmatprep.mubr.f32.mxu1 %v1887_v56 }
 0x639   :  { %1571 = vmatprep.subr.mxu1 %v1167_v54 }
 0x63a   :  { %1575 = vmatpush1.msra.mxu1 %v1166_v55 }
 0x6f3   :  { %v1550_v46 = vpop.f32.mrf.mxu1 }
 0x6f5   :  { %v1042_v47 = vpop.f32.mrf.mxu1 }
 0x6f7   :  { %v1553_v48 = vpop.f32.mrf.mxu1 }
 0x6f8   :  { %1554 = vmatprep.subr.mxu0 %v1553_v48 }
 0x6f9   :  { %v1052_v49 = vpop.f32.mrf.mxu1  ;;  %1555 = vmatpush3.msra.mxu0 %v1553_v48 }
 0x6fa   :  { %1556 = vmatprep.subr.mxu0 %v1052_v49 }
 0x6fb   :  { %1557 = vmatpush3.msra.mxu0 %v1052_v49 }
 0x6fc   :  { %1558 = vmatprep.subr.mxu0 %v1550_v46 }
 0x6fd   :  { %1559 = vmatpush3.msra.mxu0 %v1550_v46 }
 0x6fe   :  { %1560 = vmatprep.subr.mxu0 %v1042_v47 }
 0x6ff   :  { %1561 = vmatpush3.msra.mxu0 %v1042_v47 }
 0x700   :  { %1563 = vmatmul.mubr.msk.f32.vlgmr.msra.gmra.mxu0 %vm232_vm0, %v1062_v50  ;;  %1210 = vmatprep.subr.mxu0 %v1173_v41 }
 0x701   :  { %1565 = vmatprep.mubr.msk.f32.mxu0 %vm232_vm0, %v1063_v51  ;;  %1211 = vmatpush1.msra.mxu0 %v1172_v42 }
 0x702   :  { %1212 = vmatprep.subr.mxu0 %v1171_v43 }
 0x703   :  { %1213 = vmatpush1.msra.mxu0 %v1170_v44 }
 0x704   :  { %1566 = vmatmul.mubr.msk.f32.gmra.mxu0 %vm232_vm0, %v1064_v52  ;;  %1214 = vmatprep.subr.mxu0 %v1169_v45 }
 0x705   :  { %1215 = vmatpush1.msra.mxu0 %v1168_v53  ;;  %1250 = vmatprep.mubr.f32.mxu0 %v1887_v56 }
 0x706   :  { %1216 = vmatprep.subr.mxu0 %v1167_v54 }
 0x707   :  { %1217 = vmatpush1.msra.mxu0 %v1166_v55 }
 0x7c0   :  { %v1564_v58 = vpop.f32.mrf.mxu0 }
 0x7c1   :  { %v1153_v60 = vadd.f32 %v1564_v58, %v1066_v57 }
 0x7c2   :  { %v1147_v61 = vpop.f32.mrf.mxu0 }
 0x7c3   :  { %v1148_v62 = vadd.f32 %v1147_v61, %v1065_v59  ;;  %1367 = vmatmul.mubr.msk.f32.vlgmr.msra.gmra.mxu1 %vm232_vm0, %v1153_v60 }
 0x7c4   :  { %v1567_v63 = vpop.f32.mrf.mxu0  ;;  %1262 = vmatprep.mubr.f32.mxu1 %v1887_v56 }
 0x7c5   :  { %1366 = vmatmul.mubr.msk.f32.vlgmr.msra.gmra.mxu0 %vm232_vm0, %v1148_v62  ;;  %v1163_v4 = vadd.f32 %v1567_v63, %v1068_v3 }
 0x7c6   :  { %v1157_v1 = vpop.f32.mrf.mxu0 }
 0x7c7   :  { %v1158_v2 = vadd.f32 %v1157_v1, %v1067_v0 }
 0x7c9   :  { %1368 = vmatmul.mubr.msk.f32.gmra.mxu1 %vm232_vm0, %v1158_v2 }
 0x7ca   :  { %1268 = vmatprep.mubr.f32.mxu1 %v1887_v56 }
 0x7cd   :  { %1369 = vmatmul.mubr.msk.f32.gmra.mxu1 %vm232_vm0, %v1163_v4 }
 0x883   :  { %v1258_v5 = vpop.f32.mrf.mxu1 }
 0x884   :  { %v1289_v11 = vmul.f32 %v1258_v5, %v1258_v5 }
 0x885   :  { %v1252_v6 = vpop.f32.mrf.mxu0  ;;  %v1260_v7 = vpop.f32.mrf.mxu1 }
 0x886   :  { %v1288_v9 = vmul.f32 %v1252_v6, %v1252_v6  ;;  %v1302_v16 = vmul.f32 %v1260_v7, %v1260_v7  ;;  %v1276_v27 = vmul.f32 %v1260_v7, %v1258_v5 }
 0x887   :  { %v1254_v8 = vpop.f32.mrf.mxu0 }
 0x888   :  { %v1301_v12 = vmul.f32 %v1254_v8, %v1254_v8  ;;  %v1292_v15 = vadd.f32 %v1289_v11, %v1288_v9  ;;  %v1275_v23 = vmul.f32 %v1254_v8, %v1252_v6 }
 0x889   :  { %v1264_v10 = vpop.f32.mrf.mxu1 }
 0x88a   :  { %v1290_v13 = vmul.f32 %v1264_v10, %v1264_v10  ;;  %v1305_v19 = vadd.f32 %v1302_v16, %v1301_v12  ;;  %v1279_v31 = vadd.f32 %v1276_v27, %v1275_v23 }
 0x88b   :  { %v1266_v14 = vpop.f32.mrf.mxu1 }
 0x88c   :  { %v1303_v17 = vmul.f32 %v1266_v14, %v1266_v14  ;;  %v1293_v20 = vadd.f32 %v1292_v15, %v1290_v13  ;;  %v1277_v28 = vmul.f32 %v1266_v14, %v1264_v10 }
 0x88d   :  { %v1270_v18 = vpop.f32.mrf.mxu1 }
 0x88e   :  { %v1291_v21 = vmul.f32 %v1270_v18, %v1270_v18  ;;  %v1306_v24 = vadd.f32 %v1305_v19, %v1303_v17  ;;  %v1280_v35 = vadd.f32 %v1279_v31, %v1277_v28 }
 0x88f   :  { %v1272_v22 = vpop.f32.mrf.mxu1 }
 0x890   :  { %v1294_v25 = vadd.f32 %v1293_v20, %v1291_v21  ;;  %v1304_v26 = vmul.f32 %v1272_v22, %v1272_v22  ;;  %v1278_v33 = vmul.f32 %v1272_v22, %v1270_v18 }
 0x892   :  { %v1295_v29 = vrot.slane %v1294_v25, 4  ;;  %v1307_v30 = vadd.f32 %v1306_v24, %v1304_v26  ;;  %v1281_v39 = vadd.f32 %v1280_v35, %v1278_v33 }
 0x894   :  { %v1296_v32 = vadd.f32 %v1295_v29, %v1294_v25  ;;  %v1308_v34 = vrot.slane %v1307_v30, 4  ;;  %v1282_v43 = vrot.slane %v1281_v39, 4 }
 0x896   :  { %v1297_v36 = vrot.slane %v1296_v32, 2  ;;  %v1309_v37 = vadd.f32 %v1308_v34, %v1307_v30  ;;  %v1283_v47 = vadd.f32 %v1282_v43, %v1281_v39 }
 0x898   :  { %v1298_v38 = vadd.f32 %v1297_v36, %v1296_v32  ;;  %v1310_v40 = vrot.slane %v1309_v37, 2  ;;  %v1284_v50 = vrot.slane %v1283_v47, 2 }
 0x89a   :  { %v1299_v41 = vrot.slane %v1298_v38, 1  ;;  %v1311_v42 = vadd.f32 %v1310_v40, %v1309_v37  ;;  %v1285_v51 = vadd.f32 %v1284_v50, %v1283_v47 }
 0x89c   :  { %v1312_v44 = vrot.slane %v1311_v42, 1  ;;  %v1300_v45 = vadd.f32 %v1299_v41, %v1298_v38  ;;  %v1286_v52 = vrot.slane %v1285_v51, 1 }
 0x89e   :  { %v1313_v46 = vadd.f32 %v1312_v44, %v1311_v42  ;;  %v1287_v53 = vadd.f32 %v1286_v52, %v1285_v51 }
 0x8a0   :  { %v1314_v48 = vmul.f32 %v1313_v46, %v1300_v45 }
 0x8a2   :  { %v1315_v49 = vmax.f32 %v1314_v48, 1e-12 }
 0x8a4   :  { %1594 = vrsqrt.f32 %v1315_v49 }
 0x8b1   :  { %v1595_v54 = vpop.eup %1594 }
 0x8b2   :  { %v1317_v55 = vmul.f32 %v1595_v54, %v1287_v53 }
 0x8b4   :  { %1318 = vst [vmem:[%s2089_s13] sm:$0x1] %v1317_v55 }
 0x8b5   :  { %1323 = vsyncpa [#allocation3], 1 }
 0x8b6   :  { %1324 = vsyncpa [#allocation5], 1 }
 0x8b7   :  { %1325 = vsyncpa [#allocation8], 1 }
 0x8b8   :  { %1326 = vsyncpa [#allocation11], 1 }
 0x8b9   :  { %1327 = vsyncpa [#allocation14], 1 }
 0x8ba   :  { %1328 = vsyncpa [#allocation17], 1 }
 0x8bb   :  { %1329 = vsyncpa [#allocation20], 1 }

</bundles_post_ra>
